<compile_context>
chip_gen: v6e
topology: v6e:2x2x1
jax: 0.10.0
libtpu: 0.0.40
codegen_flags: <defaults>
</compile_context>

<pallas_src>
import functools

import jax
import jax.numpy as jnp
from jax import lax
from jax.experimental import pallas as pl
from jax.experimental.pallas import tpu as pltpu

BN_EPS = 1e-5


def _round_up(x, m):
    return (x + m - 1) // m * m


def _pick_image_tile(n, per_image_bytes, budget_bytes):
    nb = max(1, min(n, budget_bytes // max(per_image_bytes, 1)))
    while n % nb:
        nb -= 1
    return nb


def _conv_stats_kernel(x_ref, w_ref, mask_ref,
                       conv_ref, sum_out_ref, sumsq_out_ref,
                       slab_ref, sum_ref, sumsq_ref,
                       *, nb, cin, cout, p, pp, wp):
    """Pass 1: staged conv + per-channel sum / sum-of-squares.

    x_ref        : (Nb, Cin, L)   bf16  flat zero-padded images with +-margin
    w_ref        : (Cout, 9*Cin)  bf16  conv taps folded into the K axis
    mask_ref     : (1, Pp)        f32   1.0 on valid interior lanes, else 0.0
    conv_ref     : (Nb, Cout, Pp) f32   staged conv output (lane-dense)
    sum_out_ref  : (1, Cout, 1)   f32   per-split sum   (written at last step)
    sumsq_out_ref: (1, Cout, 1)   f32   per-split sumsq (written at last step)
    slab_ref     : (9*Cin, Pp)    bf16  per-image patch slab (VMEM scratch)
    """
    # Keep the lane tail of the slab zeroed so the matmul never sees
    # uninitialized VMEM (tail conv lanes are masked / cropped anyway).
    if pp > p:
        slab_ref[:, p:] = jnp.zeros((9 * cin, pp - p), slab_ref.dtype)

    @pl.when(pl.program_id(1) == 0)
    def _():
        sum_ref[...] = jnp.zeros_like(sum_ref)
        sumsq_ref[...] = jnp.zeros_like(sumsq_ref)

    def image_body(img, carry):
        xi = x_ref[img]                                    # (Cin, L) bf16
        # Build the 9 statically shifted tap windows ONCE per image; slab row
        # t*Cin + c holds channel c shifted by tap t.
        for t in range(9):
            dh, dw = t // 3, t % 3
            start = dh * wp + dw                           # static lane shift
            slab_ref[t * cin:(t + 1) * cin, :p] = xi[:, start:start + p]
        # Single K = 9*Cin matmul on the MXU, f32 accumulation.
        conv = jnp.dot(w_ref[...], slab_ref[...],
                       preferred_element_type=jnp.float32)  # (Cout, Pp)
        conv_ref[img] = conv                               # lane-dense stage
        # NaN-safe masking of the padded ring / lane tail for the statistics.
        masked = jnp.where(mask_ref[...] != 0.0, conv, 0.0)
        sum_ref[...] += jnp.sum(masked, axis=1, keepdims=True)
        sumsq_ref[...] += jnp.sum(masked * masked, axis=1, keepdims=True)
        return carry

    lax.fori_loop(0, nb, image_body, 0)

    # Single deferred write of the per-split statistics (one flush per split;
    # no per-step masked stores / DMA bookkeeping).
    @pl.when(pl.program_id(1) == pl.num_programs(1) - 1)
    def _():
        sum_out_ref[0] = sum_ref[...]
        sumsq_out_ref[0] = sumsq_ref[...]


def _bn_relu_kernel(conv_ref, scale_ref, shift_ref, o_ref):
    # Pass 2: pure VPU — BN folded into one FMA + ReLU over the staged conv.
    scale = scale_ref[...][None, :, :]                     # (1, Cout, 1)
    shift = shift_ref[...][None, :, :]
    o_ref[...] = jnp.maximum(conv_ref[...] * scale + shift,
                             0.0).astype(o_ref.dtype)


def encoder_block_forward(x_nchw, weight, gamma, beta):
    n, cin, h, w = x_nchw.shape
    cout = weight.shape[0]
    hp, wp = h + 2, w + 2
    p = hp * wp                        # flat padded spatial length
    pp = _round_up(p, 128)             # lane-dense length (unmasked stores)
    margin = wp + 1                    # max |tap shift| in flat coordinates
    l = p + 2 * margin

    # --- HBM-side prep: zero-pad + flatten + bf16 cast in one XLA fusion.
    # Flat-layout identity: padding every row with 2 zeros on the right and
    # the flattened image with (margin+Wp+1, margin+Wp-1) zeros reproduces the
    # conv's (1,1) spatial zero padding plus the +-margin tap headroom.
    xb = x_nchw.astype(jnp.bfloat16)
    xb = jnp.pad(xb, ((0, 0), (0, 0), (0, 0), (0, 2))).reshape(n, cin, h * wp)
    x_ext = jnp.pad(xb, ((0, 0), (0, 0), (margin + wp + 1, margin + wp - 1)))

    # Conv taps folded into K = 9*Cin; row order (tap, cin) matches the slab.
    w2d = weight.transpose(0, 2, 3, 1).reshape(cout, 9 * cin).astype(jnp.bfloat16)

    # Valid-lane mask: 1.0 on the interior of the padded grid, 0.0 on the
    # padded ring (where the flat conv wraps rows) and on the Pp lane tail.
    hh = jnp.arange(hp)[:, None]
    ww = jnp.arange(wp)[None, :]
    valid = ((hh >= 1) & (hh <= h) & (ww >= 1) & (ww <= w)).reshape(p)
    mask = jnp.pad(valid.astype(jnp.float32), (0, pp - p)).reshape(1, pp)

    # Images per grid step: big enough to amortize per-step overhead, small
    # enough to leave double-buffer headroom under the 32 MiB scoped-VMEM cap
    # below (safe on v5e/v6e's 128 MiB and v7x's 64 MiB physical VMEM).
    per_image_bytes = cin * l * 2 + 3 * cout * pp * 4      # x + stage + out
    nb = _pick_image_tile(n, per_image_bytes, 8 * 1024 * 1024)
    chunks = n // nb
    # Leading "parallel" split axis: v7x's two TensorCores each reduce half
    # the batch; partial sums are combined in the wrapper.
    n_splits = 2 if (chunks >= 2 and chunks % 2 == 0) else 1
    cps = chunks // n_splits

    conv_flops = 2 * n * pp * cout * 9 * cin
    x_bytes = n * cin * l * 2
    stage_bytes = n * cout * pp * 4

    # ---------------- pass 1: conv (staged) + BN batch statistics -----------
    conv_staged, sums, sumsqs = pl.pallas_call(
        functools.partial(_conv_stats_kernel, nb=nb, cin=cin, cout=cout,
                          p=p, pp=pp, wp=wp),
        grid=(n_splits, cps),
        in_specs=[
            pl.BlockSpec((nb, cin, l), lambda s, i: (s * cps + i, 0, 0)),
            pl.BlockSpec((cout, 9 * cin), lambda s, i: (0, 0)),    # resident
            pl.BlockSpec((1, pp), lambda s, i: (0, 0)),            # resident
        ],
        out_specs=[
            pl.BlockSpec((nb, cout, pp), lambda s, i: (s * cps + i, 0, 0)),
            pl.BlockSpec((1, cout, 1), lambda s, i: (s, 0, 0)),    # per split
            pl.BlockSpec((1, cout, 1), lambda s, i: (s, 0, 0)),    # per split
        ],
        out_shape=[
            jax.ShapeDtypeStruct((n, cout, pp), jnp.float32),
            jax.ShapeDtypeStruct((n_splits, cout, 1), jnp.float32),
            jax.ShapeDtypeStruct((n_splits, cout, 1), jnp.float32),
        ],
        scratch_shapes=[
            pltpu.VMEM((9 * cin, pp), jnp.bfloat16),   # patch slab
            pltpu.VMEM((cout, 1), jnp.float32),        # sum accumulator
            pltpu.VMEM((cout, 1), jnp.float32),        # sumsq accumulator
        ],
        compiler_params=pltpu.CompilerParams(
            dimension_semantics=("parallel", "arbitrary"),
            vmem_limit_bytes=32 * 1024 * 1024),
        cost_estimate=pl.CostEstimate(
            flops=conv_flops, transcendentals=0,
            bytes_accessed=x_bytes + stage_bytes + 2 * n_splits * cout * 4),
    )(x_ext, w2d, mask)

    # Fold BN (training mode, biased variance) into one scale/shift per chan.
    count = n * h * w
    mean = jnp.sum(sums[:, :, 0], axis=0) / count                   # (Cout,)
    var = jnp.maximum(jnp.sum(sumsqs[:, :, 0], axis=0) / count - mean * mean,
                      0.0)
    scale = gamma.astype(jnp.float32) * lax.rsqrt(var + BN_EPS)
    shift = beta.astype(jnp.float32) - mean * scale

    # ---------------- pass 2: scale/shift + ReLU over the staged conv -------
    out_pp = pl.pallas_call(
        _bn_relu_kernel,
        grid=(chunks,),
        in_specs=[
            pl.BlockSpec((nb, cout, pp), lambda i: (i, 0, 0)),
            pl.BlockSpec((cout, 1), lambda i: (0, 0)),
            pl.BlockSpec((cout, 1), lambda i: (0, 0)),
        ],
        out_specs=pl.BlockSpec((nb, cout, pp), lambda i: (i, 0, 0)),
        out_shape=jax.ShapeDtypeStruct((n, cout, pp), jnp.float32),
        compiler_params=pltpu.CompilerParams(
            dimension_semantics=("parallel",),
            vmem_limit_bytes=32 * 1024 * 1024),
        cost_estimate=pl.CostEstimate(
            flops=2 * n * cout * pp, transcendentals=0,
            bytes_accessed=2 * stage_bytes),
    )(conv_staged, scale.reshape(cout, 1), shift.reshape(cout, 1))

    # (N, Cout, Pp) -> drop lane tail -> crop the zero-padding ring -> NCHW.
    return out_pp[:, :, :p].reshape(n, cout, hp, wp)[:, :, 1:h + 1, 1:w + 1]


encoder_block_forward = jax.jit(encoder_block_forward)


def encoder_block_reference(x_nchw, weight, gamma, beta):
    # Pure-JAX reference, matched precision (bf16 operands, f32 accumulation).
    conv = lax.conv_general_dilated(
        x_nchw.astype(jnp.bfloat16), weight.astype(jnp.bfloat16),
        window_strides=(1, 1), padding=((1, 1), (1, 1)),
        dimension_numbers=("NCHW", "OIHW", "NCHW"),
        preferred_element_type=jnp.float32)
    mean = conv.mean(axis=(0, 2, 3), keepdims=True)
    var = ((conv - mean) ** 2).mean(axis=(0, 2, 3), keepdims=True)
    xhat = (conv - mean) * lax.rsqrt(var + BN_EPS)
    out = xhat * gamma.reshape(1, -1, 1, 1) + beta.reshape(1, -1, 1, 1)
    return jnp.maximum(out, 0.0)


if __name__ == "__main__":
    key = jax.random.PRNGKey(0)
    kx, kw, kg, kb = jax.random.split(key, 4)

    N, CIN, COUT, H, W = 2, 4, 8, 16, 16
    x = jax.random.normal(kx, (N, CIN, H, W), dtype=jnp.float32)

    # Conv2d(4, 8, kernel_size=3, padding=1, bias=False since use_bn=True)
    fan_in = CIN * 3 * 3
    weight = jax.random.normal(kw, (COUT, CIN, 3, 3), dtype=jnp.float32) / jnp.sqrt(fan_in)
    # BatchNorm2d(8) affine params (deterministic, non-trivial values)
    gamma = 1.0 + 0.1 * jax.random.normal(kg, (COUT,), dtype=jnp.float32)
    beta = 0.1 * jax.random.normal(kb, (COUT,), dtype=jnp.float32)

    out = jax.block_until_ready(encoder_block_forward(x, weight, gamma, beta))
    ref = jax.block_until_ready(encoder_block_reference(x, weight, gamma, beta))

    assert out.shape == (N, COUT, H, W), out.shape
    max_err = float(jnp.abs(out - ref).max())
    assert jnp.allclose(out, ref, atol=1e-3, rtol=1e-3), f"max_err={max_err}"
    print("KERNEL_OK")
</pallas_src>

<mosaic_0001>
module attributes {stable_mosaic.version = 11 : i64} {
  func.func @_conv_stats_kernel(%arg0: i32, %arg1: i32, %arg2: memref<2x4x362xbf16, #tpu.memory_space<vmem>>, %arg3: memref<8x36xbf16, #tpu.memory_space<vmem>>, %arg4: memref<1x384xf32, #tpu.memory_space<vmem>>, %arg5: memref<2x8x384xf32, #tpu.memory_space<vmem>>, %arg6: memref<1x8x1xf32, #tpu.memory_space<vmem>>, %arg7: memref<1x8x1xf32, #tpu.memory_space<vmem>>, %arg8: memref<36x384xbf16, #tpu.memory_space<vmem>>, %arg9: memref<8x1xf32, #tpu.memory_space<vmem>>, %arg10: memref<8x1xf32, #tpu.memory_space<vmem>>) attributes {dimension_semantics = [#tpu.dimension_semantics<parallel>, #tpu.dimension_semantics<arbitrary>], iteration_bounds = array<i64: 1, 1>, scalar_prefetch = 0 : i64, scratch_operands = 3 : i64, tpu.core_type = #tpu.core_type<tc>, window_params = [{transform_indices = @transform_0, window_bounds = array<i64: 2, 4, 362>}, {pipeline_mode = #tpu.pipeline_mode<synchronous>, transform_indices = @transform_1, window_bounds = array<i64: 8, 36>}, {pipeline_mode = #tpu.pipeline_mode<synchronous>, transform_indices = @transform_2, window_bounds = array<i64: 1, 384>}, {transform_indices = @transform_3, window_bounds = array<i64: 2, 8, 384>}, {transform_indices = @transform_4, window_bounds = array<i64: 1, 8, 1>}, {transform_indices = @transform_5, window_bounds = array<i64: 1, 8, 1>}]} {
    %cst = arith.constant 0.000000e+00 : bf16
    %0 = vector.broadcast %cst : bf16 to vector<36x60xbf16>
    %c0 = arith.constant 0 : index
    %c324 = arith.constant 324 : index
    %1 = vector.load %arg8[%c0, %c324] : memref<36x384xbf16, #tpu.memory_space<vmem>>, vector<36x60xbf16>
    tpu.vector_store %arg8[%c0, %c324], %0 {strides = array<i32>} : memref<36x384xbf16, #tpu.memory_space<vmem>>, vector<36x60xbf16>,
    %c0_i32 = arith.constant 0 : i32
    %2 = arith.cmpi eq, %arg1, %c0_i32 : i32
    %3 = arith.extui %2 : i1 to i32
    %c0_i32_0 = arith.constant 0 : i32
    %4 = arith.cmpi ne, %3, %c0_i32_0 : i32
    scf.if %4 {
      %cst_5 = arith.constant 0.000000e+00 : f32
      %9 = vector.broadcast %cst_5 : f32 to vector<8x1xf32>
      %c0_6 = arith.constant 0 : index
      %c0_7 = arith.constant 0 : index
      %10 = vector.load %arg9[%c0_6, %c0_7] : memref<8x1xf32, #tpu.memory_space<vmem>>, vector<8x1xf32>
      tpu.vector_store %arg9[%c0_6, %c0_7], %9 {strides = array<i32>} : memref<8x1xf32, #tpu.memory_space<vmem>>, vector<8x1xf32>,
      %cst_8 = arith.constant 0.000000e+00 : f32
      %11 = vector.broadcast %cst_8 : f32 to vector<8x1xf32>
      %c0_9 = arith.constant 0 : index
      %c0_10 = arith.constant 0 : index
      %12 = vector.load %arg10[%c0_9, %c0_10] : memref<8x1xf32, #tpu.memory_space<vmem>>, vector<8x1xf32>
      tpu.vector_store %arg10[%c0_9, %c0_10], %11 {strides = array<i32>} : memref<8x1xf32, #tpu.memory_space<vmem>>, vector<8x1xf32>,
    } else {
    }
    %c0_i32_1 = arith.constant 0 : i32
    %c2_i32 = arith.constant 2 : i32
    %5 = arith.addi %c0_i32_1, %c2_i32 : i32
    %c1_i32 = arith.constant 1 : i32
    scf.for %arg11 = %c0_i32_1 to %5 step %c1_i32  : i32 {
      %9 = arith.index_cast %arg11 : i32 to index
      %c0_5 = arith.constant 0 : index
      %c0_6 = arith.constant 0 : index
      %10 = vector.load %arg2[%9, %c0_5, %c0_6] : memref<2x4x362xbf16, #tpu.memory_space<vmem>>, vector<1x4x362xbf16>
      %11 = vector.shape_cast %10 : vector<1x4x362xbf16> to vector<4x362xbf16>
      %12 = vector.extract_strided_slice %11 {offsets = [0, 0], sizes = [4, 324], strides = [1, 1]} : vector<4x362xbf16> to vector<4x324xbf16>
      %c0_7 = arith.constant 0 : index
      %c0_8 = arith.constant 0 : index
      %13 = vector.load %arg8[%c0_7, %c0_8] : memref<36x384xbf16, #tpu.memory_space<vmem>>, vector<4x324xbf16>
      tpu.vector_store %arg8[%c0_7, %c0_8], %12 {strides = array<i32>} : memref<36x384xbf16, #tpu.memory_space<vmem>>, vector<4x324xbf16>,
      %14 = vector.extract_strided_slice %11 {offsets = [0, 1], sizes = [4, 324], strides = [1, 1]} : vector<4x362xbf16> to vector<4x324xbf16>
      %c4 = arith.constant 4 : index
      %c0_9 = arith.constant 0 : index
      %15 = vector.load %arg8[%c4, %c0_9] : memref<36x384xbf16, #tpu.memory_space<vmem>>, vector<4x324xbf16>
      tpu.vector_store %arg8[%c4, %c0_9], %14 {strides = array<i32>} : memref<36x384xbf16, #tpu.memory_space<vmem>>, vector<4x324xbf16>,
      %16 = vector.extract_strided_slice %11 {offsets = [0, 2], sizes = [4, 324], strides = [1, 1]} : vector<4x362xbf16> to vector<4x324xbf16>
      %c8 = arith.constant 8 : index
      %c0_10 = arith.constant 0 : index
      %17 = vector.load %arg8[%c8, %c0_10] : memref<36x384xbf16, #tpu.memory_space<vmem>>, vector<4x324xbf16>
      tpu.vector_store %arg8[%c8, %c0_10], %16 {strides = array<i32>} : memref<36x384xbf16, #tpu.memory_space<vmem>>, vector<4x324xbf16>,
      %18 = vector.extract_strided_slice %11 {offsets = [0, 18], sizes = [4, 324], strides = [1, 1]} : vector<4x362xbf16> to vector<4x324xbf16>
      %c12 = arith.constant 12 : index
      %c0_11 = arith.constant 0 : index
      %19 = vector.load %arg8[%c12, %c0_11] : memref<36x384xbf16, #tpu.memory_space<vmem>>, vector<4x324xbf16>
      tpu.vector_store %arg8[%c12, %c0_11], %18 {strides = array<i32>} : memref<36x384xbf16, #tpu.memory_space<vmem>>, vector<4x324xbf16>,
      %20 = vector.extract_strided_slice %11 {offsets = [0, 19], sizes = [4, 324], strides = [1, 1]} : vector<4x362xbf16> to vector<4x324xbf16>
      %c16 = arith.constant 16 : index
      %c0_12 = arith.constant 0 : index
      %21 = vector.load %arg8[%c16, %c0_12] : memref<36x384xbf16, #tpu.memory_space<vmem>>, vector<4x324xbf16>
      tpu.vector_store %arg8[%c16, %c0_12], %20 {strides = array<i32>} : memref<36x384xbf16, #tpu.memory_space<vmem>>, vector<4x324xbf16>,
      %22 = vector.extract_strided_slice %11 {offsets = [0, 20], sizes = [4, 324], strides = [1, 1]} : vector<4x362xbf16> to vector<4x324xbf16>
      %c20 = arith.constant 20 : index
      %c0_13 = arith.constant 0 : index
      %23 = vector.load %arg8[%c20, %c0_13] : memref<36x384xbf16, #tpu.memory_space<vmem>>, vector<4x324xbf16>
      tpu.vector_store %arg8[%c20, %c0_13], %22 {strides = array<i32>} : memref<36x384xbf16, #tpu.memory_space<vmem>>, vector<4x324xbf16>,
      %24 = vector.extract_strided_slice %11 {offsets = [0, 36], sizes = [4, 324], strides = [1, 1]} : vector<4x362xbf16> to vector<4x324xbf16>
      %c24 = arith.constant 24 : index
      %c0_14 = arith.constant 0 : index
      %25 = vector.load %arg8[%c24, %c0_14] : memref<36x384xbf16, #tpu.memory_space<vmem>>, vector<4x324xbf16>
      tpu.vector_store %arg8[%c24, %c0_14], %24 {strides = array<i32>} : memref<36x384xbf16, #tpu.memory_space<vmem>>, vector<4x324xbf16>,
      %26 = vector.extract_strided_slice %11 {offsets = [0, 37], sizes = [4, 324], strides = [1, 1]} : vector<4x362xbf16> to vector<4x324xbf16>
      %c28 = arith.constant 28 : index
      %c0_15 = arith.constant 0 : index
      %27 = vector.load %arg8[%c28, %c0_15] : memref<36x384xbf16, #tpu.memory_space<vmem>>, vector<4x324xbf16>
      tpu.vector_store %arg8[%c28, %c0_15], %26 {strides = array<i32>} : memref<36x384xbf16, #tpu.memory_space<vmem>>, vector<4x324xbf16>,
      %28 = vector.extract_strided_slice %11 {offsets = [0, 38], sizes = [4, 324], strides = [1, 1]} : vector<4x362xbf16> to vector<4x324xbf16>
      %c32 = arith.constant 32 : index
      %c0_16 = arith.constant 0 : index
      %29 = vector.load %arg8[%c32, %c0_16] : memref<36x384xbf16, #tpu.memory_space<vmem>>, vector<4x324xbf16>
      tpu.vector_store %arg8[%c32, %c0_16], %28 {strides = array<i32>} : memref<36x384xbf16, #tpu.memory_space<vmem>>, vector<4x324xbf16>,
      %c0_17 = arith.constant 0 : index
      %c0_18 = arith.constant 0 : index
      %30 = vector.load %arg3[%c0_17, %c0_18] : memref<8x36xbf16, #tpu.memory_space<vmem>>, vector<8x36xbf16>
      %c0_19 = arith.constant 0 : index
      %c0_20 = arith.constant 0 : index
      %31 = vector.load %arg8[%c0_19, %c0_20] : memref<36x384xbf16, #tpu.memory_space<vmem>>, vector<36x384xbf16>
      %cst_21 = arith.constant dense<0.000000e+00> : vector<8x384xf32>
      %32 = tpu.matmul %30, %31, %cst_21 {dimension_numbers = #tpu.dot_dimension_numbers<[1], [0], [0], [1], [0, 0, 1, 1], [], []>} : vector<8x36xbf16>, vector<36x384xbf16>, vector<8x384xf32> -> vector<8x384xf32>
      %33 = arith.index_cast %arg11 : i32 to index
      %c0_22 = arith.constant 0 : index
      %c0_23 = arith.constant 0 : index
      %34 = vector.load %arg5[%33, %c0_22, %c0_23] : memref<2x8x384xf32, #tpu.memory_space<vmem>>, vector<1x8x384xf32>
      %35 = vector.shape_cast %34 : vector<1x8x384xf32> to vector<8x384xf32>
      %36 = vector.shape_cast %32 : vector<8x384xf32> to vector<1x8x384xf32>
      tpu.vector_store %arg5[%33, %c0_22, %c0_23], %36 {strides = array<i32>} : memref<2x8x384xf32, #tpu.memory_space<vmem>>, vector<1x8x384xf32>,
      %c0_24 = arith.constant 0 : index
      %c0_25 = arith.constant 0 : index
      %37 = vector.load %arg4[%c0_24, %c0_25] : memref<1x384xf32, #tpu.memory_space<vmem>>, vector<1x384xf32>
      %cst_26 = arith.constant 0.000000e+00 : f32
      %38 = vector.broadcast %cst_26 : f32 to vector<1x384xf32>
      %39 = arith.cmpf one, %37, %38 : vector<1x384xf32>
      %cst_27 = arith.constant 0.000000e+00 : f32
      %40 = vector.shape_cast %39 : vector<1x384xi1> to vector<1x384xi1>
      %41 = vector.broadcast %40 : vector<1x384xi1> to vector<8x384xi1>
      %42 = vector.broadcast %cst_27 : f32 to vector<8x384xf32>
      %43 = arith.select %41, %32, %42 : vector<8x384xi1>, vector<8x384xf32>
      %c0_28 = arith.constant 0 : index
      %c0_29 = arith.constant 0 : index
      %44 = vector.load %arg9[%c0_28, %c0_29] : memref<8x1xf32, #tpu.memory_space<vmem>>, vector<8x1xf32>
      %cst_30 = arith.constant dense<0.000000e+00> : vector<8xf32>
      %45 = vector.multi_reduction <add>, %43, %cst_30 [1] : vector<8x384xf32> to vector<8xf32>
      %46 = vector.shape_cast %45 : vector<8xf32> to vector<8x1xf32>
      %47 = arith.addf %44, %46 : vector<8x1xf32>
      %c0_31 = arith.constant 0 : index
      %c0_32 = arith.constant 0 : index
      %48 = vector.load %arg9[%c0_31, %c0_32] : memref<8x1xf32, #tpu.memory_space<vmem>>, vector<8x1xf32>
      tpu.vector_store %arg9[%c0_31, %c0_32], %47 {strides = array<i32>} : memref<8x1xf32, #tpu.memory_space<vmem>>, vector<8x1xf32>,
      %c0_33 = arith.constant 0 : index
      %c0_34 = arith.constant 0 : index
      %49 = vector.load %arg10[%c0_33, %c0_34] : memref<8x1xf32, #tpu.memory_space<vmem>>, vector<8x1xf32>
      %50 = arith.mulf %43, %43 : vector<8x384xf32>
      %cst_35 = arith.constant dense<0.000000e+00> : vector<8xf32>
      %51 = vector.multi_reduction <add>, %50, %cst_35 [1] : vector<8x384xf32> to vector<8xf32>
      %52 = vector.shape_cast %51 : vector<8xf32> to vector<8x1xf32>
      %53 = arith.addf %49, %52 : vector<8x1xf32>
      %c0_36 = arith.constant 0 : index
      %c0_37 = arith.constant 0 : index
      %54 = vector.load %arg10[%c0_36, %c0_37] : memref<8x1xf32, #tpu.memory_space<vmem>>, vector<8x1xf32>
      tpu.vector_store %arg10[%c0_36, %c0_37], %53 {strides = array<i32>} : memref<8x1xf32, #tpu.memory_space<vmem>>, vector<8x1xf32>,
    }
    %c2_i32_2 = arith.constant 2 : i32
    %c0_i32_3 = arith.constant 0 : i32
    %6 = arith.cmpi eq, %arg1, %c0_i32_3 : i32
    %7 = arith.extui %6 : i1 to i32
    %c0_i32_4 = arith.constant 0 : i32
    %8 = arith.cmpi ne, %7, %c0_i32_4 : i32
    scf.if %8 {
      %c0_5 = arith.constant 0 : index
      %c0_6 = arith.constant 0 : index
      %9 = vector.load %arg9[%c0_5, %c0_6] : memref<8x1xf32, #tpu.memory_space<vmem>>, vector<8x1xf32>
      %c0_7 = arith.constant 0 : index
      %c0_8 = arith.constant 0 : index
      %c0_9 = arith.constant 0 : index
      %10 = vector.load %arg6[%c0_7, %c0_8, %c0_9] : memref<1x8x1xf32, #tpu.memory_space<vmem>>, vector<1x8x1xf32>
      %11 = vector.shape_cast %10 : vector<1x8x1xf32> to vector<8x1xf32>
      %12 = vector.shape_cast %9 : vector<8x1xf32> to vector<1x8x1xf32>
      tpu.vector_store %arg6[%c0_7, %c0_8, %c0_9], %12 {strides = array<i32>} : memref<1x8x1xf32, #tpu.memory_space<vmem>>, vector<1x8x1xf32>,
      %c0_10 = arith.constant 0 : index
      %c0_11 = arith.constant 0 : index
      %13 = vector.load %arg10[%c0_10, %c0_11] : memref<8x1xf32, #tpu.memory_space<vmem>>, vector<8x1xf32>
      %c0_12 = arith.constant 0 : index
      %c0_13 = arith.constant 0 : index
      %c0_14 = arith.constant 0 : index
      %14 = vector.load %arg7[%c0_12, %c0_13, %c0_14] : memref<1x8x1xf32, #tpu.memory_space<vmem>>, vector<1x8x1xf32>
      %15 = vector.shape_cast %14 : vector<1x8x1xf32> to vector<8x1xf32>
      %16 = vector.shape_cast %13 : vector<8x1xf32> to vector<1x8x1xf32>
      tpu.vector_store %arg7[%c0_12, %c0_13, %c0_14], %16 {strides = array<i32>} : memref<1x8x1xf32, #tpu.memory_space<vmem>>, vector<1x8x1xf32>,
    } else {
    }
    return
  }
  func.func @transform_0(%arg0: i32, %arg1: i32) -> (i32, i32, i32) {
    %c1_i32 = arith.constant 1 : i32
    %0 = arith.muli %arg0, %c1_i32 : i32
    %1 = arith.addi %0, %arg1 : i32
    %c0_i32 = arith.constant 0 : i32
    %c0_i32_0 = arith.constant 0 : i32
    %c0_i32_1 = arith.constant 0 : i32
    return %1, %c0_i32, %c0_i32_0 : i32, i32, i32
  }
  func.func @transform_1(%arg0: i32, %arg1: i32) -> (i32, i32) {
    %c0_i32 = arith.constant 0 : i32
    %c0_i32_0 = arith.constant 0 : i32
    %c0_i32_1 = arith.constant 0 : i32
    return %c0_i32, %c0_i32_0 : i32, i32
  }
  func.func @transform_2(%arg0: i32, %arg1: i32) -> (i32, i32) {
    %c0_i32 = arith.constant 0 : i32
    %c0_i32_0 = arith.constant 0 : i32
    %c0_i32_1 = arith.constant 0 : i32
    return %c0_i32, %c0_i32_0 : i32, i32
  }
  func.func @transform_3(%arg0: i32, %arg1: i32) -> (i32, i32, i32) {
    %c1_i32 = arith.constant 1 : i32
    %0 = arith.muli %arg0, %c1_i32 : i32
    %1 = arith.addi %0, %arg1 : i32
    %c0_i32 = arith.constant 0 : i32
    %c0_i32_0 = arith.constant 0 : i32
    %c0_i32_1 = arith.constant 0 : i32
    return %1, %c0_i32, %c0_i32_0 : i32, i32, i32
  }
  func.func @transform_4(%arg0: i32, %arg1: i32) -> (i32, i32, i32) {
    %c0_i32 = arith.constant 0 : i32
    %c0_i32_0 = arith.constant 0 : i32
    %c0_i32_1 = arith.constant 0 : i32
    return %arg0, %c0_i32, %c0_i32_0 : i32, i32, i32
  }
  func.func @transform_5(%arg0: i32, %arg1: i32) -> (i32, i32, i32) {
    %c0_i32 = arith.constant 0 : i32
    %c0_i32_0 = arith.constant 0 : i32
    %c0_i32_1 = arith.constant 0 : i32
    return %arg0, %c0_i32, %c0_i32_0 : i32, i32, i32
  }
}

module attributes {stable_mosaic.version = 11 : i64} {
  func.func @_bn_relu_kernel(%arg0: i32, %arg1: memref<2x8x384xf32, #tpu.memory_space<vmem>>, %arg2: memref<8x1xf32, #tpu.memory_space<vmem>>, %arg3: memref<8x1xf32, #tpu.memory_space<vmem>>, %arg4: memref<2x8x384xf32, #tpu.memory_space<vmem>>) attributes {dimension_semantics = [#tpu.dimension_semantics<parallel>], iteration_bounds = array<i64: 1>, scalar_prefetch = 0 : i64, scratch_operands = 0 : i64, tpu.core_type = #tpu.core_type<tc>, window_params = [{transform_indices = @transform_0, window_bounds = array<i64: 2, 8, 384>}, {pipeline_mode = #tpu.pipeline_mode<synchronous>, transform_indices = @transform_1, window_bounds = array<i64: 8, 1>}, {pipeline_mode = #tpu.pipeline_mode<synchronous>, transform_indices = @transform_2, window_bounds = array<i64: 8, 1>}, {transform_indices = @transform_3, window_bounds = array<i64: 2, 8, 384>}]} {
    %c0 = arith.constant 0 : index
    %c0_0 = arith.constant 0 : index
    %0 = vector.load %arg2[%c0, %c0_0] : memref<8x1xf32, #tpu.memory_space<vmem>>, vector<8x1xf32>
    %1 = vector.shape_cast %0 : vector<8x1xf32> to vector<1x8x1xf32>
    %c0_1 = arith.constant 0 : index
    %c0_2 = arith.constant 0 : index
    %2 = vector.load %arg3[%c0_1, %c0_2] : memref<8x1xf32, #tpu.memory_space<vmem>>, vector<8x1xf32>
    %3 = vector.shape_cast %2 : vector<8x1xf32> to vector<1x8x1xf32>
    %c0_3 = arith.constant 0 : index
    %c0_4 = arith.constant 0 : index
    %c0_5 = arith.constant 0 : index
    %4 = vector.load %arg1[%c0_3, %c0_4, %c0_5] : memref<2x8x384xf32, #tpu.memory_space<vmem>>, vector<2x8x384xf32>
    %5 = vector.broadcast %1 : vector<1x8x1xf32> to vector<2x8x384xf32>
    %6 = arith.mulf %4, %5 : vector<2x8x384xf32>
    %7 = vector.broadcast %3 : vector<1x8x1xf32> to vector<2x8x384xf32>
    %8 = arith.addf %6, %7 : vector<2x8x384xf32>
    %cst = arith.constant 0.000000e+00 : f32
    %9 = vector.broadcast %cst : f32 to vector<2x8x384xf32>
    %10 = arith.maximumf %8, %9 : vector<2x8x384xf32>
    %c0_6 = arith.constant 0 : index
    %c0_7 = arith.constant 0 : index
    %c0_8 = arith.constant 0 : index
    %11 = vector.load %arg4[%c0_6, %c0_7, %c0_8] : memref<2x8x384xf32, #tpu.memory_space<vmem>>, vector<2x8x384xf32>
    tpu.vector_store %arg4[%c0_6, %c0_7, %c0_8], %10 {strides = array<i32>} : memref<2x8x384xf32, #tpu.memory_space<vmem>>, vector<2x8x384xf32>,
    return
  }
  func.func @transform_0(%arg0: i32) -> (i32, i32, i32) {
    %c0_i32 = arith.constant 0 : i32
    %c0_i32_0 = arith.constant 0 : i32
    %c0_i32_1 = arith.constant 0 : i32
    return %arg0, %c0_i32, %c0_i32_0 : i32, i32, i32
  }
  func.func @transform_1(%arg0: i32) -> (i32, i32) {
    %c0_i32 = arith.constant 0 : i32
    %c0_i32_0 = arith.constant 0 : i32
    %c0_i32_1 = arith.constant 0 : i32
    return %c0_i32, %c0_i32_0 : i32, i32
  }
  func.func @transform_2(%arg0: i32) -> (i32, i32) {
    %c0_i32 = arith.constant 0 : i32
    %c0_i32_0 = arith.constant 0 : i32
    %c0_i32_1 = arith.constant 0 : i32
    return %c0_i32, %c0_i32_0 : i32, i32
  }
  func.func @transform_3(%arg0: i32) -> (i32, i32, i32) {
    %c0_i32 = arith.constant 0 : i32
    %c0_i32_0 = arith.constant 0 : i32
    %c0_i32_1 = arith.constant 0 : i32
    return %arg0, %c0_i32, %c0_i32_0 : i32, i32, i32
  }
}

</mosaic_0001>

<bundles_post_ra>
// kernel: encoder_block_forward.3
= control target key start
LH: loop header
LB: loop body
LE: loop exit
PB: predicated region body
PF: predicated region fallthrough
CT: control target
= control target key end

     0   :  { %v62_v0 = vmov 0   ;;  %s125_s1 = inlined_call_operand.vmem [shape: f32[8,1], index: 1, kind: input, shape index: {}]   ;;  %s126_s2 = inlined_call_operand.vmem [shape: f32[8,1], index: 2, kind: input, shape index: {}]   ;;  %s127_s0 = inlined_call_operand.vmem [shape: f32[2,8,384], index: 0, kind: input, shape index: {}]   ;;  %s128_s3 = inlined_call_operand.vmem [shape: f32[2,8,384], index: 3, kind: output, shape index: {}]  }
   0x1   :  { %61 = vset.pattern.permute.xlu0 %v62_v0  ;;  %v14_v1 = vld [vmem:[%s125_s1] sm:$0xff]  ;;  %v17_v5 = vld [vmem:[%s127_s0 + $0x8] sm:$0xff]  ;;  %v18_v6 = vld [vmem:[%s127_s0 + $0x10] sm:$0xff] }
   0x2   :  { %24 = vperm.xlu0 %61, %v14_v1   ;;  %v15_v2 = vld [vmem:[%s126_s2] sm:$0xff]  ;;  %v19_v7 = vld [vmem:[%s127_s0 + $0x18] sm:$0xff]  ;;  %v21_v9 = vld [vmem:[%s127_s0 + $0x28] sm:$0xff] }
   0x3   :  { %v16_v3 = vld [vmem:[%s127_s0] sm:$0xff] }
   0x4   :  { %v20_v8 = vld [vmem:[%s127_s0 + $0x20] sm:$0xff] }
   0x6   :  { %35 = vperm.xlu0 %61, %v15_v2  }
  0x7d   :  { %v25_v4 = vpop.permute.xlu0 %24 }
  0x7e   :  { %v27_v10 = vmul.f32 %v25_v4, %v16_v3  ;;  %v28_v11 = vmul.f32 %v25_v4, %v17_v5  ;;  %v29_v12 = vmul.f32 %v25_v4, %v18_v6  ;;  %v30_v13 = vmul.f32 %v25_v4, %v19_v7 }
  0x7f   :  { %v31_v15 = vmul.f32 %v25_v4, %v20_v8  ;;  %v32_v16 = vmul.f32 %v25_v4, %v21_v9 }
  0x81   :  { %v36_v14 = vpop.permute.xlu0 %35 }
  0x82   :  { %v38_v17 = vadd.f32 %v36_v14, %v27_v10  ;;  %v39_v18 = vadd.f32 %v36_v14, %v28_v11  ;;  %v40_v19 = vadd.f32 %v36_v14, %v29_v12  ;;  %v41_v20 = vadd.f32 %v36_v14, %v30_v13 }
  0x83   :  { %v42_v21 = vadd.f32 %v36_v14, %v31_v15  ;;  %v43_v22 = vadd.f32 %v36_v14, %v32_v16 }
  0x84   :  { %v44_v23 = vmax.f32 %v38_v17, 0.0  ;;  %v45_v24 = vmax.f32 %v39_v18, 0.0  ;;  %v46_v25 = vmax.f32 %v40_v19, 0.0  ;;  %v47_v26 = vmax.f32 %v41_v20, 0.0 }
  0x85   :  { %v48_v27 = vmax.f32 %v42_v21, 0.0  ;;  %v49_v28 = vmax.f32 %v43_v22, 0.0 }
  0x86   :  { %50 = vst [vmem:[%s128_s3] sm:$0xff] %v44_v23  ;;  %51 = vst [vmem:[%s128_s3 + $0x8] sm:$0xff] %v45_v24 }
  0x87   :  { %52 = vst [vmem:[%s128_s3 + $0x10] sm:$0xff] %v46_v25  ;;  %53 = vst [vmem:[%s128_s3 + $0x18] sm:$0xff] %v47_v26 }
  0x88   :  { %54 = vst [vmem:[%s128_s3 + $0x20] sm:$0xff] %v48_v27  ;;  %55 = vst [vmem:[%s128_s3 + $0x28] sm:$0xff] %v49_v28 }

// kernel: encoder_block_forward.2
= control target key start
LH: loop header
LB: loop body
LE: loop exit
PB: predicated region body
PF: predicated region fallthrough
CT: control target
= control target key end

     0   :  { %vm59_vm0 = vcmask 1044000   ;;  %vm64_vm1 = vcmask 1041952   ;;  %vm70_vm2 = vcmask 7168   ;;  %v538_v0 = vmov 0   ;;  %s584_s18 = smov 0   ;;  %s648_s0 = inlined_call_operand.vmem [shape: bf16[2,4,362], index: 0, kind: input, shape index: {}]   ;;  %s649_s1 = inlined_call_operand.vmem [shape: bf16[8,36], index: 1, kind: input, shape index: {}]   ;;  %s650_s2 = inlined_call_operand.vmem [shape: f32[1,384], index: 2, kind: input, shape index: {}]   ;;  %s651_s3 = inlined_call_operand.vmem [shape: f32[2,8,384], index: 3, kind: output, shape index: {0}]   ;;  %s652_s4 = inlined_call_operand.vmem [shape: f32[1,8,1], index: 4, kind: output, shape index: {1}]   ;;  %s653_s5 = inlined_call_operand.vmem [shape: f32[1,8,1], index: 5, kind: output, shape index: {2}]  }
   0x1   :  { %60 = vst.msk [vmem:[#allocation2 + $0x8] sm:$0xf] %vm59_vm0, %v538_v0  ;;  %61 = vst.msk [vmem:[#allocation2 + $0x14] sm:$0xf] %vm59_vm0, %v538_v0  ;;  %v539_v1 = vmov 0.0  }
   0x2   :  { %62 = vst.msk [vmem:[#allocation2 + $0x20] sm:$0xf] %vm59_vm0, %v538_v0  ;;  %63 = vst.msk [vmem:[#allocation2 + $0x2c] sm:$0xf] %vm59_vm0, %v538_v0 }
   0x3   :  { %65 = vst.msk [vmem:[#allocation2 + $0x38] sm:$0x3] %vm64_vm1, %v538_v0 }
   0x4   :  { %71 = vst.msk [vmem:[#allocation3] sm:$0xff] %vm70_vm2, %v539_v1  ;;  %72 = vst.msk [vmem:[#allocation4] sm:$0xff] %vm70_vm2, %v539_v1 }
   0x5 LB: > { %v88_v2 = vlaneseq  ;;  %v540_v3 = vmov 1983009808   ;;  %s482_s19 = smul.u32 6, %s536_s18  ;;  %s541_s23 = smov 109   ;;  %vm102_vm3 = vcmask 549888   ;;  %v543_v13 = vmov 0.0   ;;  %s536_s18 = sphi %s584_s18, %s78_s18  }
   0x6   : > { %v86_v4 = vunpack.c.l.s4 %v540_v3  ;;  %s542_s24 = smov 90   ;;  %488 = vmatprep.subr.bf16.mxu1 %v543_v13  ;;  %s544_s25 = smov 108   ;;  %vm550_vm4 = vmmov 0   ;;  %v551_v15 = vmov 0   ;;  %vm125_vm5 = vcmask 551938  }
   0x7   : > { %v590_v5 = vshrl.u32 %v88_v2, 7  ;;  %s81_s22 = scalar_lea.vmem %s648_s0, %s482_s19  ;;  %s545_s26 = smov 92   ;;  %494 = vmatprep.mubr.msk.bf16.mxu1 %vm550_vm4, %v543_v13  ;;  %315 = vmatprep.mubr.bf16.mxu0 %v551_v15  ;;  %vm118_vm6 = vcmask 1043456   ;;  %vm212_vm7 = vcmask 736256   ;;  %vm160_vm8 = vcmask 891904  }
   0x8   : > { %v87_v6 = vunpack.c.0.s8 %v86_v4  ;;  %v82_v7 = vld [vmem:[%s81_s22] sm:$0x3f]  ;;  %s546_s27 = smov 91   ;;  %s547_s28 = smov 127   ;;  %vm173_vm9 = vcmask 883712   ;;  %vm273_vm10 = vcmask 1041408  }
   0x9   : > { %468 = vst.sshfl [vmem:[#allocation2] sm:$0xf pattern:$0x76325410] %v82_v7  ;;  %v84_v9 = vcombine.high %v82_v7, %v82_v7  ;;  %v104_v12 = vcombine.low %v82_v7, %v82_v7  ;;  %s548_s29 = smov 126   ;;  %s549_s30 = smov 110  }
   0xa   : > { %v90_v8 = vsub.s32 %v87_v6, %v590_v5  ;;  %vm186_vm11 = vcmask 752640   ;;  %vm199_vm12 = vcmask 744448   ;;  %vm120_vm13 = vcmask 1039360   ;;  %s483_s10 = smul.u32 24, %s536_s18  ;;  %s78_s18 = sadd.s32 1, %s536_s18  }
   0xb   : > { %vm134_vm14 = vcmask 1031168   ;;  %vm147_vm15 = vcmask 900096   ;;  %vm269_vm0 = vcmask 293888   ;;  %p75_p0 = scmp.ge.s32.totalorder %s78_s18, 2  }
   0xc   : > { %v91_v10 = vrot.slane %v82_v7, %v90_v8  ;;  %v98_v11 = vrot.slane %v84_v9, %v90_v8  ;;  %v111_v14 = vrot.slane %v104_v12, %v90_v8  ;;  %s365_s13 = scalar_lea.vmem %s651_s3, %s483_s10 }
   0xe   : > { %153 = vrot.lane.b32.xlu1 %v91_v10, %s541_s23  ;;  %205 = vrot.lane.b32.xlu0 %v91_v10, %s542_s24  ;;  %103 = vst.msk [vmem:[#allocation2 + $0x8] sm:$0x3] %vm102_vm3, %v98_v11 }
  0x12   : > { %168 = vrot.lane.b32.xlu1 %v91_v10, %s544_s25  ;;  %207 = vrot.lane.b32.xlu0 %v98_v11, %s542_s24 }
  0x16   : > { %155 = vrot.lane.b32.xlu1 %v98_v11, %s541_s23  ;;  %166 = vrot.lane.b32.xlu0 %v111_v14, %s544_s25 }
  0x1a   : > { %181 = vrot.lane.b32.xlu1 %v98_v11, %s545_s26  ;;  %179 = vrot.lane.b32.xlu0 %v91_v10, %s545_s26 }
  0x1e   : > { %194 = vrot.lane.b32.xlu1 %v91_v10, %s546_s27  ;;  %192 = vrot.lane.b32.xlu0 %v111_v14, %s546_s27 }
  0x22   : > { %114 = vrot.lane.b32.xlu1 %v91_v10, %s547_s28  ;;  %112 = vrot.lane.b32.xlu0 %v111_v14, %s547_s28 }
  0x26   : > { %129 = vrot.lane.b32.xlu1 %v98_v11, %s548_s29  ;;  %127 = vrot.lane.b32.xlu0 %v91_v10, %s548_s29  ;;  %v218_v11 = vld [vmem:[%s649_s1] sm:$0xf] }
  0x2a   : > { %142 = vrot.lane.b32.xlu1 %v91_v10, %s549_s30  ;;  %140 = vrot.lane.b32.xlu0 %v111_v14, %s549_s30  ;;  %v369_v14 = vld [vmem:[%s650_s2] sm:$0x7] }
  0x2b   : > { %vm370_vm1 = vcmp.ne.f32.partialorder %v369_v14, 0.0 }
  0x80   : > { %v154_v16 = vpop.permute.xlu1 %153  ;;  %v206_v17 = vpop.permute.xlu0 %205 }
  0x81   : > { %v209_v20 = vrot.slane %v206_v17, 4  ;;  %v157_v26 = vrot.slane %v154_v16, 4 }
  0x84   : > { %v169_v18 = vpop.permute.xlu1 %168  ;;  %v208_v19 = vpop.permute.xlu0 %207 }
  0x85   : > { %178 = vst.msk [vmem:[#allocation2 + $0x20] sm:$0xc] %vm125_vm5, %v169_v18  ;;  %v210_v21 = vrot.slane %v208_v19, 4  ;;  %v171_v27 = vrot.slane %v169_v18, 4  ;;  %v371_v18 = vsel %vm370_vm1, 1, %v551_v15 }
  0x86   : > { %217 = vst.msk [vmem:[#allocation2 + $0x38] sm:$0x3] %vm102_vm3, %v208_v19  ;;  %v378_v19 = vsub.s32 1, %v590_v5 }
  0x87   : > { %v211_v22 = vsel %vm118_vm6, %v209_v20, %v210_v21 }
  0x88   : > { %v213_v23 = vsel %vm212_vm7, %v206_v17, %v211_v22  ;;  %v156_v24 = vpop.permute.xlu1 %155  ;;  %v167_v25 = vpop.permute.xlu0 %166  ;;  %v374_v17 = vsub.s32 0, %v590_v5 }
  0x89   : > { %216 = vst [vmem:[#allocation2 + $0x30] sm:$0x33] %v213_v23  ;;  %v158_v28 = vrot.slane %v156_v24, 4  ;;  %165 = vst.msk [vmem:[#allocation2 + $0x20] sm:$0x3] %vm102_vm3, %v156_v24  ;;  %v170_v29 = vrot.slane %v167_v25, 4  ;;  %v379_v23 = vrot.slane %v371_v18, %v378_v19 }
  0x8a   : > { %v375_v21 = vrot.slane %v371_v18, %v374_v17 }
  0x8b   : > { %v159_v30 = vsel %vm118_vm6, %v157_v26, %v158_v28  ;;  %v172_v31 = vsel %vm118_vm6, %v170_v29, %v171_v27 }
  0x8c   : > { %v161_v32 = vsel %vm160_vm8, %v154_v16, %v159_v30  ;;  %v174_v33 = vsel %vm173_vm9, %v167_v25, %v172_v31  ;;  %v182_v34 = vpop.permute.xlu1 %181  ;;  %v180_v35 = vpop.permute.xlu0 %179  ;;  %v382_v16 = vsub.s32 2, %v590_v5  ;;  %vm384_vm4 = vcmp.eq.s32.totalorder %v375_v21, 1 }
  0x8d   : > { %v520_v36 = vld [vmem:[#allocation2 + $0x38] ss:$0 sps:$4 sm:$0x33]   ;;  %164 = vst [vmem:[#allocation2 + $0x18] sm:$0x33] %v161_v32  ;;  %v184_v37 = vrot.slane %v182_v34, 4 }
  0x8e   : > { %177 = vst [vmem:[#allocation2 + $0x18] sm:$0xcc] %v174_v33  ;;  %191 = vst.msk [vmem:[#allocation2 + $0x2c] sm:$0x3] %vm102_vm3, %v182_v34  ;;  %v183_v38 = vrot.slane %v180_v35, 4  ;;  %v281_v39 = vsel %vm273_vm10, %v520_v36, 0  ;;  %v383_v20 = vrot.slane %v371_v18, %v382_v16 }
  0x8f   : > { %489 = vmatpush3.bf16.msra.mxu1 %v281_v39  ;;  %v390_v39 = vld [vmem:[#allocation3] sm:$0xff] }
  0x90   : > { %v185_v40 = vsel %vm118_vm6, %v183_v38, %v184_v37  ;;  %v195_v42 = vpop.permute.xlu1 %194  ;;  %v193_v43 = vpop.permute.xlu0 %192  ;;  %v227_v44 = vld [vmem:[#allocation2 + $0x30] sm:$0x33]  ;;  %490 = vmatprep.subr.bf16.mxu1 %v543_v13 }
  0x91   : > { %v187_v41 = vsel %vm186_vm11, %v180_v35, %v185_v40  ;;  %v197_v45 = vrot.slane %v195_v42, 4  ;;  %204 = vst.msk [vmem:[#allocation2 + $0x2c] sm:$0xc] %vm125_vm5, %v195_v42  ;;  %v196_v46 = vrot.slane %v193_v43, 4  ;;  %v476_v47 = vcombine.high %v227_v44, %v227_v44 }
  0x92   : > { %190 = vst [vmem:[#allocation2 + $0x24] sm:$0x33] %v187_v41  ;;  %v475_v48 = vcombine.low %v227_v44, %v227_v44  ;;  %v398_v41 = vld [vmem:[#allocation4] sm:$0xff] }
  0x93   : > { %v198_v49 = vsel %vm118_vm6, %v196_v46, %v197_v45  ;;  %478 = vmatprep.subr.msk.bf16.mxu0 %vm273_vm10, %v476_v47 }
  0x94   : > { %v275_v50 = vsel %vm273_vm10, %v475_v48, 0  ;;  %v200_v51 = vsel %vm199_vm12, %v193_v43, %v198_v49  ;;  %v115_v52 = vpop.permute.xlu1 %114  ;;  %v113_v53 = vpop.permute.xlu0 %112 }
  0x95   : > { %294 = vmatpush1.bf16.msra.mxu0 %v275_v50  ;;  %203 = vst [vmem:[#allocation2 + $0x24] sm:$0xcc] %v200_v51  ;;  %v117_v54 = vrot.slane %v115_v52, 4  ;;  %126 = vst.msk [vmem:[#allocation2 + $0x8] sm:$0xc] %vm125_vm5, %v115_v52  ;;  %v116_v55 = vrot.slane %v113_v53, 4 }
  0x97   : > { %v119_v56 = vsel %vm118_vm6, %v116_v55, %v117_v54 }
  0x98   : > { %v121_v57 = vsel %vm120_vm13, %v113_v53, %v119_v56  ;;  %v130_v58 = vpop.permute.xlu1 %129  ;;  %v128_v59 = vpop.permute.xlu0 %127  ;;  %v522_v60 = vld [vmem:[#allocation2 + $0x20] ss:$12 sps:$4 sm:$0xff]  }
  0x99   : > { %124 = vst [vmem:[#allocation2] sm:$0xcc] %v121_v57  ;;  %v132_v61 = vrot.slane %v130_v58, 4  ;;  %139 = vst.msk [vmem:[#allocation2 + $0x14] sm:$0x3] %vm102_vm3, %v130_v58  ;;  %v131_v62 = vrot.slane %v128_v59, 4  ;;  %491 = vmatpush3.bf16.msra.mxu1 %v522_v60 }
  0x9a   : > { %492 = vmatprep.subr.bf16.mxu1 %v543_v13  ;;  %vm386_vm3 = vcmp.eq.s32.totalorder %v383_v20, 1 }
  0x9b   : > { %v133_v63 = vsel %vm118_vm6, %v131_v62, %v132_v61 }
  0x9c   : > { %v135_v0 = vsel %vm134_vm14, %v128_v59, %v133_v63  ;;  %v143_v1 = vpop.permute.xlu1 %142  ;;  %v141_v2 = vpop.permute.xlu0 %140  ;;  %v523_v3 = vld [vmem:[#allocation2 + $0x1c] ss:$12 sps:$4 sm:$0xff]   ;;  %v525_v4 = vld [vmem:[#allocation2 + $0x18] ss:$12 sps:$4 sm:$0xff]  }
  0x9d   : > { %138 = vst [vmem:[#allocation2 + $0xc] sm:$0x33] %v135_v0  ;;  %v145_v6 = vrot.slane %v143_v1, 4  ;;  %152 = vst.msk [vmem:[#allocation2 + $0x14] sm:$0xc] %vm125_vm5, %v143_v1  ;;  %v144_v7 = vrot.slane %v141_v2, 4  ;;  %295 = vmatprep.subr.bf16.mxu0 %v523_v3 }
  0x9e   : > { %296 = vmatpush1.bf16.msra.mxu0 %v525_v4  ;;  %vm385_vm5 = vcmp.eq.s32.totalorder %v379_v23, 1 }
  0x9f   : > { %v146_v8 = vsel %vm118_vm6, %v144_v7, %v145_v6 }
  0xa0   : > { %v148_v9 = vsel %vm147_vm15, %v141_v2, %v146_v8 }
  0xa1   : > { %151 = vst [vmem:[#allocation2 + $0xc] sm:$0xcc] %v148_v9 }
  0xa4   : > { %v526_v10 = vld [vmem:[#allocation2 + $0x8] ss:$12 sps:$4 sm:$0xff]  }
  0xa5   : > { %493 = vmatpush3.bf16.msra.mxu1 %v526_v10 }
  0xa8   : > { %v527_v12 = vld [vmem:[#allocation2 + $0x4] ss:$12 sps:$4 sm:$0xff]   ;;  %v529_v13 = vld [vmem:[#allocation2] ss:$12 sps:$4 sm:$0xff]   ;;  %495 = vmatmul.mubr.msk.bf16.vlgmr.msra.gmra.mxu1 %vm269_vm0, %v218_v11 }
  0xa9   : > { %297 = vmatprep.subr.bf16.mxu0 %v527_v12 }
  0xaa   : > { %298 = vmatpush1.bf16.msra.mxu0 %v529_v13 }
  0xad   : > { %479 = vmatmul.mubr.msk.bf16.vlgmr.msra.gmra.mxu0 %vm269_vm0, %v218_v11 }
 0x168   : > { %v358_v22 = vpop.f32.mrf.mxu1 }
 0x169   : > { %368 = vst [vmem:[%s365_s13 + $0x10] sm:$0xff] %v358_v22  ;;  %v389_v27 = vsel %vm386_vm3, %v358_v22, 0.0 }
 0x16a   : > { %v496_v24 = vpop.f32.mrf.mxu1  ;;  %v401_v30 = vmul.f32 %v389_v27, %v389_v27 }
 0x16c   : > { %v361_v25 = vpop.f32.mrf.mxu1 }
 0x16d   : > { %v317_v26 = vpop.f32.mrf.mxu0 }
 0x16e   : > { %366 = vst [vmem:[%s365_s13] sm:$0xff] %v317_v26  ;;  %v387_v15 = vsel %vm384_vm4, %v317_v26, 0.0  ;;  %v497_v28 = vpop.f32.mrf.mxu1 }
 0x16f   : > { %v319_v5 = vpop.f32.mrf.mxu0  ;;  %v399_v31 = vmul.f32 %v387_v15, %v387_v15 }
 0x170   : > { %367 = vst [vmem:[%s365_s13 + $0x8] sm:$0xff] %v319_v5  ;;  %v388_v29 = vsel %vm385_vm5, %v319_v5, 0.0 }
 0x171   : > { %v391_v32 = vadd.f32 %v388_v29, %v387_v15  ;;  %v400_v33 = vmul.f32 %v388_v29, %v388_v29  ;;  %v321_v34 = vpop.f32.mrf.mxu0 }
 0x173   : > { %v322_v35 = vpop.f32.mrf.mxu0  ;;  %v392_v36 = vadd.f32 %v391_v32, %v389_v27  ;;  %v402_v37 = vadd.f32 %v400_v33, %v399_v31 }
 0x175   : > { %393 = vadd.xlane.f32.xlu0 %v392_v36  ;;  %v403_v38 = vadd.f32 %v402_v37, %v401_v30 }
 0x177   : > { %404 = vadd.xlane.f32.xlu1 %v403_v38 }
 0x1fe   : > { %v394_v40 = vpop.xlane.xlu0 %393 }
 0x1ff   : > { %v395_v42 = vadd.f32 %v394_v40, %v390_v39  ;;  %77 = sbr.rel (!%p75_p0) target bundleno = 5 (0x5), region = 72 }
 0x200   : > { %v405_v43 = vpop.xlane.xlu1 %404 }
 0x201   : > { %397 = vst.msk [vmem:[#allocation3] sm:$0xff] %vm70_vm2, %v395_v42  ;;  %v406_v44 = vadd.f32 %v405_v43, %v398_v41 }
 0x203   : > { %407 = vst.msk [vmem:[#allocation4] sm:$0xff] %vm70_vm2, %v406_v44 }
 0x208   :  { %v411_v45 = vld [vmem:[#allocation3] sm:$0xff] }
 0x209   :  { %413 = vst.msk [vmem:[%s652_s4] sm:$0xff] %vm70_vm2, %v411_v45 }
 0x20a   :  { %v414_v46 = vld [vmem:[#allocation4] sm:$0xff] }
 0x20b   :  { %415 = vst.msk [vmem:[%s653_s5] sm:$0xff] %vm70_vm2, %v414_v46 }

</bundles_post_ra>
